<compile_context>
chip_gen: v7x
topology: tpu7x:2x2x1
jax: 0.10.0
libtpu: 0.0.40
codegen_flags: <defaults>
</compile_context>

<pallas_src>
import jax
import jax.numpy as jnp
from jax import lax
from jax.experimental import pallas as pl
from jax.experimental.pallas import tpu as pltpu

EPS = 1e-5  # nn.BatchNorm2d default eps


def _block_kernel(xs_ref, w_ref, gb_ref, o_ref):
    """Single-step fused Conv3x3 -> MaxPool2x2 -> BN(train) -> ReLU.

    xs_ref : (9*Cin, 4*NP) bf16  lane-concat of the 4 pooling-offset im2col slabs
    w_ref  : (Cout, 9*Cin) bf16  folded conv weights (row order t*Cin + c)
    gb_ref : (Cout, 2)     f32   [:,0]=gamma, [:,1]=beta
    o_ref  : (Cout, NP)    f32   channel-major output
    """
    # One MXU matmul covers all 9 taps, all 4 pooling offsets, whole batch.
    y = jnp.dot(w_ref[...], xs_ref[...],
                preferred_element_type=jnp.float32)          # (Cout, 4*NP) f32

    npx = y.shape[-1] // 4                                    # static, 128-aligned
    pooled = jnp.maximum(jnp.maximum(y[:, 0:npx], y[:, npx:2 * npx]),
                         jnp.maximum(y[:, 2 * npx:3 * npx], y[:, 3 * npx:4 * npx]))

    # Training-mode BatchNorm2d: per-channel batch mean / biased variance over N*Ho*Wo
    # (lane-direction reductions), folded to a per-channel scale/shift, then ReLU.
    count = float(pooled.shape[-1])
    mean = jnp.sum(pooled, axis=-1, keepdims=True) / count
    d = pooled - mean
    var = jnp.sum(d * d, axis=-1, keepdims=True) / count
    gamma = gb_ref[:, 0:1]
    beta = gb_ref[:, 1:2]
    scale = gamma * lax.rsqrt(var + EPS)                      # (Cout, 1)
    shift = beta - mean * scale                               # (Cout, 1)
    o_ref[...] = jnp.maximum(pooled * scale + shift, 0.0)


def custom_residual_block(x_nchw, w_oihw, gamma, beta):
    """JAX wrapper: NCHW in, NCHW out (N, Cout, H//2, W//2)."""
    N, Cin, H, W = x_nchw.shape
    Cout = w_oihw.shape[0]
    Ho, Wo = H // 2, W // 2
    P = Ho * Wo
    NP = N * P            # 128 here -> lane-dense output, unmasked stores
    K9 = 9 * Cin

    # Channel-major once; all tap extraction below is pure strided slicing (no transposes).
    x_cm = jnp.transpose(x_nchw, (1, 0, 2, 3)).astype(jnp.bfloat16)   # (Cin, N, H, W)
    x_pad = jnp.pad(x_cm, ((0, 0), (0, 0), (1, 1), (1, 1)))           # conv padding=1

    # xs2[t*Cin + c, d*NP + n*P + oh*Wo + ow] = x_pad[c, n, 2*oh+dh+kh, 2*ow+dw+kw]
    # where t = kh*3 + kw and d = dh*2 + dw (maxpool offset).
    rows = []
    for kh in range(3):
        for kw in range(3):
            offs = []
            for dh in range(2):
                for dw in range(2):
                    s, t = dh + kh, dw + kw
                    sl = x_pad[:, :, s:s + 2 * Ho:2, t:t + 2 * Wo:2]  # (Cin, N, Ho, Wo)
                    offs.append(sl.reshape(Cin, NP))
            rows.append(jnp.concatenate(offs, axis=-1))               # (Cin, 4*NP)
    xs2 = jnp.stack(rows, axis=0).reshape(K9, 4 * NP)                 # (9*Cin, 4*NP) bf16

    # Folded weights, row order t*Cin + c to match xs2; tiny one-off transpose.
    w_t = jnp.transpose(w_oihw, (0, 2, 3, 1)).reshape(Cout, K9).astype(jnp.bfloat16)
    gb = jnp.stack([gamma, beta], axis=-1).astype(jnp.float32)        # (Cout, 2)

    out_cm = pl.pallas_call(
        _block_kernel,
        out_shape=jax.ShapeDtypeStruct((Cout, NP), jnp.float32),
        grid=(1,),
        in_specs=[
            pl.BlockSpec((K9, 4 * NP), lambda i: (0, 0)),
            pl.BlockSpec((Cout, K9), lambda i: (0, 0)),
            pl.BlockSpec((Cout, 2), lambda i: (0, 0)),
        ],
        out_specs=pl.BlockSpec((Cout, NP), lambda i: (0, 0)),
        compiler_params=pltpu.CompilerParams(
            dimension_semantics=("arbitrary",)),
    )(xs2, w_t, gb)

    out = out_cm.reshape(Cout, N, Ho, Wo)
    return jnp.transpose(out, (1, 0, 2, 3))                           # back to NCHW


def _reference(x, w, gamma, beta):
    """Pure-JAX f32 reference with identical semantics (for validation)."""
    conv = lax.conv_general_dilated(
        x, w, window_strides=(1, 1), padding=((1, 1), (1, 1)),
        dimension_numbers=("NCHW", "OIHW", "NCHW"))
    pooled = lax.reduce_window(conv, -jnp.inf, lax.max,
                               (1, 1, 2, 2), (1, 1, 2, 2), "VALID")
    mean = pooled.mean(axis=(0, 2, 3), keepdims=True)
    var = ((pooled - mean) ** 2).mean(axis=(0, 2, 3), keepdims=True)
    y = (pooled - mean) * lax.rsqrt(var + EPS)
    y = y * gamma.reshape(1, -1, 1, 1) + beta.reshape(1, -1, 1, 1)
    return jnp.maximum(y, 0.0)


if __name__ == "__main__":
    key = jax.random.PRNGKey(0)
    k_x, k_w = jax.random.split(key)

    N, Cin, H, W = 2, 4, 16, 16     # in_planes = 4
    Cout = 8                        # planes = 8

    x = jax.random.normal(k_x, (N, Cin, H, W), jnp.float32)
    conv_w = 0.1 * jax.random.normal(k_w, (Cout, Cin, 3, 3), jnp.float32)
    gamma = jnp.ones((Cout,), jnp.float32)    # nn.BatchNorm2d default init
    beta = jnp.zeros((Cout,), jnp.float32)

    out = jax.block_until_ready(custom_residual_block(x, conv_w, gamma, beta))
    ref = _reference(x, conv_w, gamma, beta)

    assert out.shape == (N, Cout, H // 2, W // 2), out.shape
    # bf16 dot operands (f32 accumulation): tolerance loosened vs. the f32 path.
    assert jnp.allclose(out, ref, atol=2e-2, rtol=2e-2), float(jnp.abs(out - ref).max())
    print("KERNEL_OK")
</pallas_src>

<mosaic_0001>
module attributes {stable_mosaic.version = 11 : i64} {
  func.func @_block_kernel(%arg0: i32, %arg1: memref<36x512xbf16, #tpu.memory_space<vmem>>, %arg2: memref<8x36xbf16, #tpu.memory_space<vmem>>, %arg3: memref<8x2xf32, #tpu.memory_space<vmem>>, %arg4: memref<8x128xf32, #tpu.memory_space<vmem>>) attributes {dimension_semantics = [#tpu.dimension_semantics<arbitrary>], iteration_bounds = array<i64: 1>, scalar_prefetch = 0 : i64, scratch_operands = 0 : i64, tpu.core_type = #tpu.core_type<tc>, window_params = [{pipeline_mode = #tpu.pipeline_mode<synchronous>, transform_indices = @transform_0, window_bounds = array<i64: 36, 512>}, {pipeline_mode = #tpu.pipeline_mode<synchronous>, transform_indices = @transform_1, window_bounds = array<i64: 8, 36>}, {pipeline_mode = #tpu.pipeline_mode<synchronous>, transform_indices = @transform_2, window_bounds = array<i64: 8, 2>}, {pipeline_mode = #tpu.pipeline_mode<synchronous>, transform_indices = @transform_3, window_bounds = array<i64: 8, 128>}]} {
    %c0 = arith.constant 0 : index
    %c0_0 = arith.constant 0 : index
    %0 = vector.load %arg2[%c0, %c0_0] : memref<8x36xbf16, #tpu.memory_space<vmem>>, vector<8x36xbf16>
    %c0_1 = arith.constant 0 : index
    %c0_2 = arith.constant 0 : index
    %1 = vector.load %arg1[%c0_1, %c0_2] : memref<36x512xbf16, #tpu.memory_space<vmem>>, vector<36x512xbf16>
    %cst = arith.constant dense<0.000000e+00> : vector<8x512xf32>
    %2 = tpu.matmul %0, %1, %cst {dimension_numbers = #tpu.dot_dimension_numbers<[1], [0], [0], [1], [0, 0, 1, 1], [], []>} : vector<8x36xbf16>, vector<36x512xbf16>, vector<8x512xf32> -> vector<8x512xf32>
    %3 = vector.extract_strided_slice %2 {offsets = [0, 0], sizes = [8, 128], strides = [1, 1]} : vector<8x512xf32> to vector<8x128xf32>
    %4 = vector.extract_strided_slice %2 {offsets = [0, 128], sizes = [8, 128], strides = [1, 1]} : vector<8x512xf32> to vector<8x128xf32>
    %5 = arith.maximumf %3, %4 : vector<8x128xf32>
    %6 = vector.extract_strided_slice %2 {offsets = [0, 256], sizes = [8, 128], strides = [1, 1]} : vector<8x512xf32> to vector<8x128xf32>
    %7 = vector.extract_strided_slice %2 {offsets = [0, 384], sizes = [8, 128], strides = [1, 1]} : vector<8x512xf32> to vector<8x128xf32>
    %8 = arith.maximumf %6, %7 : vector<8x128xf32>
    %9 = arith.maximumf %5, %8 : vector<8x128xf32>
    %cst_3 = arith.constant dense<0.000000e+00> : vector<8xf32>
    %10 = vector.multi_reduction <add>, %9, %cst_3 [1] : vector<8x128xf32> to vector<8xf32>
    %11 = vector.shape_cast %10 : vector<8xf32> to vector<8x1xf32>
    %cst_4 = arith.constant 1.280000e+02 : f32
    %12 = vector.broadcast %cst_4 : f32 to vector<8x1xf32>
    %13 = arith.divf %11, %12 : vector<8x1xf32>
    %14 = vector.broadcast %13 : vector<8x1xf32> to vector<8x128xf32>
    %15 = arith.subf %9, %14 : vector<8x128xf32>
    %16 = arith.mulf %15, %15 : vector<8x128xf32>
    %cst_5 = arith.constant dense<0.000000e+00> : vector<8xf32>
    %17 = vector.multi_reduction <add>, %16, %cst_5 [1] : vector<8x128xf32> to vector<8xf32>
    %18 = vector.shape_cast %17 : vector<8xf32> to vector<8x1xf32>
    %cst_6 = arith.constant 1.280000e+02 : f32
    %19 = vector.broadcast %cst_6 : f32 to vector<8x1xf32>
    %20 = arith.divf %18, %19 : vector<8x1xf32>
    %c0_7 = arith.constant 0 : index
    %c0_8 = arith.constant 0 : index
    %21 = vector.load %arg3[%c0_7, %c0_8] : memref<8x2xf32, #tpu.memory_space<vmem>>, vector<8x1xf32>
    %c0_9 = arith.constant 0 : index
    %c1 = arith.constant 1 : index
    %22 = vector.load %arg3[%c0_9, %c1] : memref<8x2xf32, #tpu.memory_space<vmem>>, vector<8x1xf32>
    %cst_10 = arith.constant 9.99999974E-6 : f32
    %23 = vector.broadcast %cst_10 : f32 to vector<8x1xf32>
    %24 = arith.addf %20, %23 : vector<8x1xf32>
    %25 = math.rsqrt %24 : vector<8x1xf32>
    %26 = arith.mulf %21, %25 : vector<8x1xf32>
    %27 = arith.mulf %13, %26 : vector<8x1xf32>
    %28 = arith.subf %22, %27 : vector<8x1xf32>
    %29 = vector.broadcast %26 : vector<8x1xf32> to vector<8x128xf32>
    %30 = arith.mulf %9, %29 : vector<8x128xf32>
    %31 = vector.broadcast %28 : vector<8x1xf32> to vector<8x128xf32>
    %32 = arith.addf %30, %31 : vector<8x128xf32>
    %cst_11 = arith.constant 0.000000e+00 : f32
    %33 = vector.broadcast %cst_11 : f32 to vector<8x128xf32>
    %34 = arith.maximumf %32, %33 : vector<8x128xf32>
    %c0_12 = arith.constant 0 : index
    %c0_13 = arith.constant 0 : index
    %35 = vector.load %arg4[%c0_12, %c0_13] : memref<8x128xf32, #tpu.memory_space<vmem>>, vector<8x128xf32>
    tpu.vector_store %arg4[%c0_12, %c0_13], %34 {strides = array<i32>} : memref<8x128xf32, #tpu.memory_space<vmem>>, vector<8x128xf32>,
    return
  }
  func.func @transform_0(%arg0: i32) -> (i32, i32) {
    %c0_i32 = arith.constant 0 : i32
    %c0_i32_0 = arith.constant 0 : i32
    %c0_i32_1 = arith.constant 0 : i32
    return %c0_i32, %c0_i32_0 : i32, i32
  }
  func.func @transform_1(%arg0: i32) -> (i32, i32) {
    %c0_i32 = arith.constant 0 : i32
    %c0_i32_0 = arith.constant 0 : i32
    %c0_i32_1 = arith.constant 0 : i32
    return %c0_i32, %c0_i32_0 : i32, i32
  }
  func.func @transform_2(%arg0: i32) -> (i32, i32) {
    %c0_i32 = arith.constant 0 : i32
    %c0_i32_0 = arith.constant 0 : i32
    %c0_i32_1 = arith.constant 0 : i32
    return %c0_i32, %c0_i32_0 : i32, i32
  }
  func.func @transform_3(%arg0: i32) -> (i32, i32) {
    %c0_i32 = arith.constant 0 : i32
    %c0_i32_0 = arith.constant 0 : i32
    %c0_i32_1 = arith.constant 0 : i32
    return %c0_i32, %c0_i32_0 : i32, i32
  }
}

</mosaic_0001>

<bundles_post_ra>
// kernel: tpu_custom_call.1
= control target key start
LH: loop header
LB: loop body
LE: loop exit
PB: predicated region body
PF: predicated region fallthrough
CT: control target
= control target key end

     0   :  { %8 = vsyncpa [#allocation3], 0  ;;  %s389_s0 = inlined_call_operand.hbm [shape: bf16[36,512], index: 0, kind: input, shape index: {}]   ;;  %s390_s1 = inlined_call_operand.vmem [shape: bf16[8,36], index: 1, kind: input, shape index: {}]   ;;  %s391_s2 = inlined_call_operand.vmem [shape: f32[8,2], index: 2, kind: input, shape index: {}]   ;;  %s392_s3 = inlined_call_operand.hbm [shape: f32[8,128], index: 3, kind: output, shape index: {}]  }
   0x1   :  { %9 = vsyncpa [#allocation4], 0  ;;  %s332_s12 = smov [#allocation2]   ;;  %s284_s16 = scalar_lea.hbm %s389_s0, 1280 }
   0x2   :  { %s15_s13 = sshll.u32 %s332_s12, 4  ;;  %p285_p0 = scmp.ne.s32.totalorder %s389_s0, %s284_s16  ;;  %s16_s13 = int_to_ptr.vmem [resolvable:$true] %s15_s13 }
   0x3   :  { %p288_p1 = scmp.lt.u32.totalorder %s284_s16, %s389_s0 }
   0x5   :  { %p290_p2 = pnand %p288_p1, %p285_p0 }
   0x7   :  { %293 = shalt.err (!%p290_p2)
}
   0x8   :  { %s294_s21 = scalar_lea.vmem %s16_s13, 1280  ;;  %p299_p4 = scmp.lt.s32.totalorder %s16_s13, %s16_s13 }
   0x9   :  { %p295_p3 = scmp.ne.s32.totalorder %s16_s13, %s294_s21  ;;  %p300_p5 = scmp.lt.s32.totalorder %s294_s21, %s294_s21 }
   0xb   :  { %p301_p6 = por %p300_p5, %p299_p4 }
   0xd   :  { %p302_p7 = pnand %p301_p6, %p295_p3 }
   0xf   :  { %305 = shalt.err (!%p302_p7)
}
  0x10   :  { %s333_s22 = smov 256   ;;  %s334_s23 = smov 16  }
  0x11   :  { %21 = dma.hbm_to_vmem [thread:$0]  %s389_s0, 1280, %s16_s13, [#allocation3], %s333_s22, %s333_s22, %s334_s23  }
  0x12   :  { %328 = dma.done.wait [#allocation3], 1280  }
  0x13   :  { %329 = vsyncadd [#allocation3], 4294966016  ;;  %v335_v0 = vmov 0   ;;  %v266_v1 = vld [vmem:[#allocation2 + $0x4] ss:$16 sps:$4 sm:$0xff]   ;;  %vm95_vm0 = vcmask 1041408  }
  0x14   :  { %140 = vmatprep.mubr.bf16.mxu0 %v335_v0  ;;  %181 = vmatprep.mubr.bf16.mxu1 %v335_v0  ;;  %v268_v2 = vld [vmem:[#allocation2 + $0xc] ss:$16 sps:$4 sm:$0xff]   ;;  %v270_v3 = vld [vmem:[#allocation2] ss:$16 sps:$4 sm:$0xff]   ;;  %v271_v4 = vld [vmem:[#allocation2 + $0x8] ss:$16 sps:$4 sm:$0xff]  }
  0x15   :  { %264 = vset.pattern.permute.xlu1 %v335_v0  ;;  %108 = vmatprep.subr.bf16.mxu0 %v266_v1  ;;  %v272_v5 = vld [vmem:[#allocation2 + $0x24] ss:$16 sps:$4 sm:$0xff]   ;;  %v274_v6 = vld [vmem:[#allocation2 + $0x2c] ss:$16 sps:$4 sm:$0xff]   ;;  %v276_v7 = vld [vmem:[#allocation2 + $0x20] ss:$16 sps:$4 sm:$0xff]  }
  0x16   :  { %149 = vmatprep.subr.bf16.mxu1 %v268_v2  ;;  %109 = vmatpush1.bf16.msra.mxu0 %v270_v3  ;;  %v277_v8 = vld [vmem:[#allocation2 + $0x28] ss:$16 sps:$4 sm:$0xff]   ;;  %v39_v9 = vld [vmem:[#allocation2 + $0x40] sm:$0x33]  ;;  %vm91_vm1 = vcmask 293888   ;;  %v336_v36 = vmov 1  }
  0x17   :  { %150 = vmatpush1.bf16.msra.mxu1 %v271_v4  ;;  %110 = vmatprep.subr.bf16.mxu0 %v272_v5  ;;  %v40_v10 = vld [vmem:[#allocation2 + $0x48] sm:$0x33]  ;;  %v250_v11 = vcombine.high %v39_v9, %v39_v9  ;;  %v249_v13 = vcombine.low %v39_v9, %v39_v9  ;;  %v30_v17 = vld [vmem:[%s390_s1] sm:$0xf]  ;;  %s337_s28 = smov 1   ;;  %s338_s29 = smov [#allocation5]  }
  0x18   :  { %151 = vmatprep.subr.bf16.mxu1 %v274_v6  ;;  %v252_v12 = vcombine.high %v40_v10, %v40_v10  ;;  %v251_v14 = vcombine.low %v40_v10, %v40_v10  ;;  %265 = vset.pattern.permute.xlu0 %v336_v36  ;;  %v202_v37 = vld [vmem:[%s391_s2] sm:$0xff]  ;;  %s232_s30 = sshll.u32 %s338_s29, 4  ;;  %s233_s30 = int_to_ptr.vmem [resolvable:$true] %s232_s30 }
  0x19   :  { %v97_v15 = vsel %vm95_vm0, %v249_v13, 0  ;;  %s306_s4 = scalar_lea.vmem %s233_s30, 128  ;;  %p311_p9 = scmp.lt.s32.totalorder %s233_s30, %s233_s30 }
  0x1a   :  { %111 = vmatpush1.bf16.msra.mxu0 %v276_v7  ;;  %v103_v16 = vsel %vm95_vm0, %v251_v14, 0  ;;  %p307_p8 = scmp.ne.s32.totalorder %s233_s30, %s306_s4  ;;  %p312_p10 = scmp.lt.s32.totalorder %s306_s4, %s306_s4 }
  0x1b   :  { %152 = vmatpush1.bf16.msra.mxu1 %v277_v8  ;;  %253 = vmatprep.subr.msk.bf16.mxu0 %vm95_vm0, %v250_v11 }
  0x1c   :  { %255 = vmatprep.subr.msk.bf16.mxu1 %vm95_vm0, %v252_v12  ;;  %p313_p11 = por %p312_p10, %p311_p9 }
  0x1e   :  { %113 = vmatpush1.bf16.msra.mxu0 %v97_v15  ;;  %p314_p12 = pnand %p313_p11, %p307_p8 }
  0x1f   :  { %154 = vmatpush1.bf16.msra.mxu1 %v103_v16 }
  0x21   :  { %254 = vmatmul.mubr.msk.bf16.vlgmr.msra.gmra.mrb[0].mxu0 %vm91_vm1, %v30_v17 }
  0x22   :  { %256 = vmatmul.mubr.msk.bf16.vlgmr.msra.gmra.mrb[0].mxu1 %vm91_vm1, %v30_v17 }
  0xf4   :  { %v142_v18 = vpop.f32.mrb[0].mxu0 }
  0xf5   :  { %v183_v19 = vpop.f32.mrb[0].mxu1  ;;  %v144_v20 = vpop.f32.mrb[1].mxu0 }
  0xf6   :  { %v185_v21 = vpop.f32.mrb[1].mxu1  ;;  %v190_v22 = vmax.f32 %v142_v18, %v144_v20  ;;  %v146_v24 = vpop.f32.mrb[2].mxu0 }
  0xf7   :  { %v191_v23 = vmax.f32 %v183_v19, %v185_v21  ;;  %v187_v25 = vpop.f32.mrb[2].mxu1  ;;  %v147_v26 = vpop.f32.mrb[3].mxu0 }
  0xf8   :  { %v188_v27 = vpop.f32.mrb[3].mxu1 }
  0xf9   :  { %v192_v28 = vmax.f32 %v190_v22, %v191_v23 }
  0xfb   :  { %193 = vadd.xlane.f32.xlu0 %v192_v28 }
 0x188   :  { %v194_v29 = vpop.xlane.xlu0 %193 }
 0x189   :  { %v196_v30 = vmul.f32 0.0078125, %v194_v29 }
 0x18b   :  { %v197_v31 = vsub.f32 %v192_v28, %v196_v30 }
 0x18d   :  { %v198_v32 = vmul.f32 %v197_v31, %v197_v31 }
 0x18f   :  { %199 = vadd.xlane.f32.xlu0 %v198_v32 }
 0x21c   :  { %v200_v33 = vpop.xlane.xlu0 %199 }
 0x21d   :  { %v201_v34 = vmul.f32 0.0078125, %v200_v33 }
 0x21f   :  { %v203_v35 = vadd.f32 1e-05, %v201_v34 }
 0x221   :  { %282 = vrsqrt.f32 %v203_v35 }
 0x22b   :  { %v283_v38 = vpop.eup %282 }
 0x22c   :  { %v205_v39 = vmul.f32 %v283_v38, %v202_v37 }
 0x22e   :  { %v206_v40 = vmul.f32 %v205_v39, %v196_v30 }
 0x230   :  { %208 = vrot.lane.b32.xlu1 %v206_v40, %s337_s28 }
 0x234   :  { %214 = vperm.xlu1 %264, %v205_v39  }
 0x2a2   :  { %v209_v41 = vpop.permute.xlu1 %208 }
 0x2a3   :  { %v211_v42 = vsub.f32 %v202_v37, %v209_v41 }
 0x2a5   :  { %220 = vperm.xlu0 %265, %v211_v42  }
 0x2b3   :  { %v215_v43 = vpop.permute.xlu1 %214 }
 0x2b4   :  { %v217_v44 = vmul.f32 %v215_v43, %v192_v28 }
 0x324   :  { %v221_v45 = vpop.permute.xlu0 %220 }
 0x325   :  { %v223_v46 = vadd.f32 %v221_v45, %v217_v44 }
 0x327   :  { %v224_v47 = vmax.f32 %v223_v46, 0.0 }
 0x329   :  { %225 = vst [vmem:[#allocation5] sm:$0xff] %v224_v47 }
 0x32a   :  { %317 = shalt.err (!%p314_p12)
}
 0x32b   :  { %s318_s6 = scalar_lea.hbm %s392_s3, 128 }
 0x32c   :  { %p319_p13 = scmp.ne.s32.totalorder %s392_s3, %s318_s6  ;;  %p322_p0 = scmp.lt.u32.totalorder %s318_s6, %s392_s3 }
 0x32e   :  { %p324_p1 = pnand %p322_p0, %p319_p13 }
 0x330   :  { %327 = shalt.err (!%p324_p1)
}
 0x331   :  { %235 = dma.vmem_to_hbm [thread:$0]  %s233_s30, 128, %s392_s3, [#allocation4]  }
 0x332   :  { %330 = dma.done.wait [#allocation4], 128  }
 0x333   :  { %331 = vsyncadd [#allocation4], 4294967168 }
 0x334   :  { %239 = vsyncpa [#allocation3], 1 }
 0x335   :  { %240 = vsyncpa [#allocation4], 1 }

</bundles_post_ra>
